<compile_context>
chip_gen: v6e
topology: v6e:2x2x1
jax: 0.10.0
libtpu: 0.0.40
codegen_flags: <defaults>
</compile_context>

<pallas_src>
import functools

import jax
import jax.numpy as jnp
import numpy as np
from jax.experimental import pallas as pl
from jax.experimental.pallas import tpu as pltpu

_LANE = 128


def _round_up(n, m):
    return ((n + m - 1) // m) * m


def _tpu_budgets():
    """(block_budget_bytes, vmem_limit_bytes) derived from the chip generation."""
    vmem_bytes = None
    try:
        vmem_bytes = pltpu.get_tpu_info().vmem_capacity_bytes
    except Exception:
        vmem_bytes = None
    if vmem_bytes is None:
        vmem_bytes = 64 * 1024 * 1024  # conservative (v7x-sized) fallback
    if vmem_bytes >= 96 * 1024 * 1024:
        # v5e / v6e: 128 MiB VMEM. Big resident slabs keep most shapes on the
        # one-pass fused path and amortize per-step overhead.
        return 16 * 1024 * 1024, 104 * 1024 * 1024
    # v7x: 64 MiB per TensorCore. ~6x the block is live (double-buffered input
    # + double-buffered output + temporaries from x*wsc and the broadcast gate).
    return 8 * 1024 * 1024, 48 * 1024 * 1024


# --------------------------------------------------------------------------
# One-pass fused kernel: whole (Bt, C, HW) slab resident in VMEM per step.
# --------------------------------------------------------------------------
def _scse_fused_kernel(inv_hw, x_ref, w1t_ref, b1_ref, w2t_ref, b2_ref,
                       wsc_ref, bs_ref, o_ref):
    x = x_ref[...]                                                        # (Bt, C, HW)

    # ---- cSE: global avg pool -> (C->C/r) -> ReLU -> (C/r->C) -> sigmoid
    avg = jnp.sum(x, axis=-1) * inv_hw                                    # (Bt, C)
    h = jnp.dot(avg, w1t_ref[...], preferred_element_type=jnp.float32)    # (Bt, Cr)
    h = jnp.maximum(h + b1_ref[...], 0.0)
    g = jnp.dot(h, w2t_ref[...], preferred_element_type=jnp.float32)      # (Bt, C)
    cse = jax.nn.sigmoid(g + b2_ref[...])                                 # (Bt, C)

    # ---- sSE: 1x1 conv (C->1) across space -> sigmoid (VPU mul + sublane sum).
    wsc = wsc_ref[...]                                                    # (C, 1)
    s = jnp.sum(x * wsc[None, :, :], axis=1, keepdims=True)               # (Bt, 1, HW)
    sse = jax.nn.sigmoid(s + bs_ref[0])                                   # (Bt, 1, HW)

    # ---- combine, factored: x * (cSE + sSE)  -> one mul per output vreg.
    o_ref[...] = x * (cse[:, :, None] + sse)


def _scse_fused(x2, w1t, b1r, w2t, b2r, wsc, bss,
                block_budget_bytes, vmem_limit_bytes):
    B, C, HW = x2.shape
    Cr = w1t.shape[1]

    # Batch-tile size: biggest divisor of B whose block fits the budget, while
    # keeping >=2 grid steps when B >= 2 (v7x has 2 TensorCores per chip).
    slab_bytes = C * _round_up(HW, _LANE) * 4
    bt_cap = max(1, block_budget_bytes // slab_bytes)
    if B >= 2:
        bt_cap = min(bt_cap, max(1, B // 2))
    bt = 1
    for d in range(1, B + 1):
        if B % d == 0 and d <= bt_cap:
            bt = d

    kernel = functools.partial(_scse_fused_kernel, 1.0 / HW)
    return pl.pallas_call(
        kernel,
        out_shape=jax.ShapeDtypeStruct((B, C, HW), jnp.float32),
        grid_spec=pltpu.PrefetchScalarGridSpec(
            num_scalar_prefetch=0,
            grid=(B // bt,),
            in_specs=[
                pl.BlockSpec((bt, C, HW), lambda b: (b, 0, 0)),    # x (full HW: masked trailing vst only)
                pl.BlockSpec((C, Cr), lambda b: (0, 0)),           # w1.T
                pl.BlockSpec((1, Cr), lambda b: (0, 0)),           # b1
                pl.BlockSpec((Cr, C), lambda b: (0, 0)),           # w2.T
                pl.BlockSpec((1, C), lambda b: (0, 0)),            # b2
                pl.BlockSpec((C, 1), lambda b: (0, 0)),            # ws as column
                pl.BlockSpec(memory_space=pltpu.MemorySpace.SMEM), # bs scalar
            ],
            out_specs=pl.BlockSpec((bt, C, HW), lambda b: (b, 0, 0)),
        ),
        compiler_params=pltpu.CompilerParams(
            dimension_semantics=("parallel",),
            vmem_limit_bytes=vmem_limit_bytes),
    )(x2, w1t, b1r, w2t, b2r, wsc, bss)


# --------------------------------------------------------------------------
# Two-pass path (large feature maps / B==1): cSE gate precomputed (tiny),
# then an HW-tiled kernel applies both gates with lane-dense tiles.
# Out-of-bounds lanes of the ragged last tile only ever feed per-lane math and
# are masked on the store, so no padding copy is needed.
# --------------------------------------------------------------------------
def _scse_apply_kernel(x_ref, cse_ref, wsc_ref, bs_ref, o_ref):
    x = x_ref[...]                                                        # (1, C, THW)
    wsc = wsc_ref[...]                                                    # (C, 1)
    s = jnp.sum(x * wsc[None, :, :], axis=1, keepdims=True)               # (1, 1, THW)
    sse = jax.nn.sigmoid(s + bs_ref[0])
    o_ref[...] = x * (cse_ref[...] + sse)                                 # factored combine


def _scse_two_pass(x2, w1t, b1r, w2t, b2r, wsc, bss,
                   block_budget_bytes, vmem_limit_bytes, min_hw_tiles=1):
    B, C, HW = x2.shape

    # pass (a): tiny cSE gate in plain JAX (one extra read of x; small next to
    # the apply kernel's read+write traffic).
    avg = jnp.mean(x2, axis=-1)                                           # (B, C)
    h = jax.nn.relu(avg @ w1t + b1r)                                      # (B, Cr)
    cse = jax.nn.sigmoid(h @ w2t + b2r)                                   # (B, C)
    cse = cse[:, :, None].astype(jnp.float32)                             # (B, C, 1)

    # pass (b): balanced, lane-dense HW tiles over the UNPADDED array.
    HW_l = _round_up(HW, _LANE)
    thw_max = max(_LANE, (block_budget_bytes // (C * 4)) // _LANE * _LANE)
    n = max(pl.cdiv(HW_l, thw_max), min_hw_tiles, 1)
    n = min(n, HW_l // _LANE)                      # can't split below one lane group
    thw = _round_up(pl.cdiv(HW_l, n), _LANE)
    n_tiles = pl.cdiv(HW, thw)

    # TODO(synk): optional bf16 HBM in/out mode (gates in f32) would ~halve the
    # streamed bytes on bandwidth-starved v5e; kept f32 to match the reference.
    return pl.pallas_call(
        _scse_apply_kernel,
        out_shape=jax.ShapeDtypeStruct((B, C, HW), jnp.float32),
        grid_spec=pltpu.PrefetchScalarGridSpec(
            num_scalar_prefetch=0,
            grid=(B, n_tiles),
            in_specs=[
                pl.BlockSpec((1, C, thw), lambda b, t: (b, 0, t)),   # x tile
                pl.BlockSpec((1, C, 1), lambda b, t: (b, 0, 0)),     # cSE gate
                pl.BlockSpec((C, 1), lambda b, t: (0, 0)),           # ws as column
                pl.BlockSpec(memory_space=pltpu.MemorySpace.SMEM),   # bs scalar
            ],
            out_specs=pl.BlockSpec((1, C, thw), lambda b, t: (b, 0, t)),
        ),
        compiler_params=pltpu.CompilerParams(
            dimension_semantics=("parallel", "parallel"),
            vmem_limit_bytes=vmem_limit_bytes),
    )(x2, cse, wsc, bss)


# --------------------------------------------------------------------------
# Public wrapper
# --------------------------------------------------------------------------
def scse_forward(x_nchw, params, *, block_budget_bytes=None, vmem_limit_bytes=None):
    """x_nchw: (B, C, H, W) float32. Returns (B, C, H, W) float32."""
    w1, b1, w2, b2, ws, bs = params
    x_nchw = x_nchw.astype(jnp.float32)
    B, C, H, W = x_nchw.shape
    HW = H * W
    Cr = w1.shape[0]

    auto_budget, auto_limit = _tpu_budgets()
    if block_budget_bytes is None:
        block_budget_bytes = auto_budget
    if vmem_limit_bytes is None:
        vmem_limit_bytes = auto_limit

    # Pre-transpose 1x1-conv weights for (Bt, C) @ (C, Cr) matmuls; reshape
    # biases for broadcasting; sSE weight as a (C, 1) column; scalar bias->SMEM.
    w1t = jnp.transpose(w1)          # (C, Cr)
    w2t = jnp.transpose(w2)          # (Cr, C)
    b1r = b1.reshape(1, Cr)
    b2r = b2.reshape(1, C)
    wsc = ws.reshape(C, 1)
    bss = bs.reshape(1)

    x2 = x_nchw.reshape(B, C, HW)

    HW_l = _round_up(HW, _LANE)
    slab_bytes = C * HW_l * 4
    fits = slab_bytes <= block_budget_bytes
    # Fused only when it both fits VMEM and yields >=2 grid steps (B >= 2);
    # B==1 goes to the HW-tiled path (both v7x TCs + DMA/compute overlap),
    # unless HW is too small to split into >=2 lane groups.
    use_fused = fits and (B >= 2 or HW_l < 2 * _LANE)

    if use_fused:
        out2 = _scse_fused(x2, w1t, b1r, w2t, b2r, wsc, bss,
                           block_budget_bytes, vmem_limit_bytes)
    else:
        min_hw_tiles = pl.cdiv(4, B) if B < 4 else 1
        out2 = _scse_two_pass(x2, w1t, b1r, w2t, b2r, wsc, bss,
                              block_budget_bytes, vmem_limit_bytes,
                              min_hw_tiles=min_hw_tiles)
    return out2.reshape(B, C, H, W)


def init_params(key, in_channels, reduction=16):
    """Deterministic synthetic weights matching nn.Conv2d 1x1 shapes."""
    cr = in_channels // reduction
    assert cr >= 1, "in_channels must be >= reduction"
    k1, k2, k3, k4, k5, k6 = jax.random.split(key, 6)
    w1 = jax.random.normal(k1, (cr, in_channels), jnp.float32) * 0.2   # cSE conv1 weight
    b1 = jax.random.normal(k2, (cr, 1), jnp.float32) * 0.1             # cSE conv1 bias
    w2 = jax.random.normal(k3, (in_channels, cr), jnp.float32) * 0.2   # cSE conv2 weight
    b2 = jax.random.normal(k4, (in_channels, 1), jnp.float32) * 0.1    # cSE conv2 bias
    ws = jax.random.normal(k5, (1, in_channels), jnp.float32) * 0.2    # sSE conv weight
    bs = jax.random.normal(k6, (1, 1), jnp.float32) * 0.1              # sSE conv bias
    return (w1, b1, w2, b2, ws, bs)


def scse_reference(x_nchw, params):
    """Pure-JAX reference mirroring the PyTorch forward, for verification."""
    w1, b1, w2, b2, ws, bs = params
    avg = jnp.mean(x_nchw, axis=(2, 3))                                 # (B, C)
    h = jax.nn.relu(avg @ w1.T + b1[:, 0])                              # (B, Cr)
    cse = jax.nn.sigmoid(h @ w2.T + b2[:, 0])[:, :, None, None]         # (B, C, 1, 1)
    s = jnp.einsum("bchw,c->bhw", x_nchw, ws[0]) + bs[0, 0]             # (B, H, W)
    sse = jax.nn.sigmoid(s)[:, None, :, :]                              # (B, 1, H, W)
    return x_nchw * cse + x_nchw * sse


if __name__ == "__main__":
    reduction = 16
    key = jax.random.PRNGKey(0)
    kx, kp, kx2, kx3 = jax.random.split(key, 4)

    # 1) Fused single-pass path, lane-aligned HW.
    B, C, H, W = 2, 32, 16, 16
    params = init_params(kp, C, reduction)
    x = jax.random.normal(kx, (B, C, H, W), jnp.float32)
    ref = scse_reference(x, params)
    out = jax.block_until_ready(scse_forward(x, params))
    np.testing.assert_allclose(np.asarray(out), np.asarray(ref), rtol=1e-5, atol=1e-5)

    # 2) Fused path with HW not a multiple of 128 (masked trailing stores, no pad copy).
    x_odd = jax.random.normal(kx2, (2, 32, 12, 13), jnp.float32)
    ref_odd = scse_reference(x_odd, params)
    out_odd = jax.block_until_ready(scse_forward(x_odd, params))
    np.testing.assert_allclose(np.asarray(out_odd), np.asarray(ref_odd), rtol=1e-5, atol=1e-5)

    # 3) Two-pass HW-tiled path: forced via a tiny block budget (ragged last tile).
    out2 = jax.block_until_ready(
        scse_forward(x_odd, params, block_budget_bytes=16 * 1024))
    np.testing.assert_allclose(np.asarray(out2), np.asarray(ref_odd), rtol=1e-5, atol=1e-5)

    # 4) B == 1 routes to the HW-tiled path (>=2 parallel grid steps for v7x).
    x1 = jax.random.normal(kx3, (1, 32, 16, 16), jnp.float32)
    ref1 = scse_reference(x1, params)
    out1 = jax.block_until_ready(scse_forward(x1, params))
    np.testing.assert_allclose(np.asarray(out1), np.asarray(ref1), rtol=1e-5, atol=1e-5)

    print("KERNEL_OK")
</pallas_src>

<mosaic_0001>
module attributes {stable_mosaic.version = 11 : i64} {
  func.func @_scse_fused_kernel(%arg0: i32, %arg1: memref<1x32x256xf32, #tpu.memory_space<vmem>>, %arg2: memref<32x2xf32, #tpu.memory_space<vmem>>, %arg3: memref<1x2xf32, #tpu.memory_space<vmem>>, %arg4: memref<2x32xf32, #tpu.memory_space<vmem>>, %arg5: memref<1x32xf32, #tpu.memory_space<vmem>>, %arg6: memref<32x1xf32, #tpu.memory_space<vmem>>, %arg7: memref<1xf32, #tpu.memory_space<smem>>, %arg8: memref<1x32x256xf32, #tpu.memory_space<vmem>>) attributes {dimension_semantics = [#tpu.dimension_semantics<parallel>], iteration_bounds = array<i64: 2>, scalar_prefetch = 0 : i64, scratch_operands = 0 : i64, tpu.core_type = #tpu.core_type<tc>, window_params = [{transform_indices = @transform_0, window_bounds = array<i64: 1, 32, 256>}, {pipeline_mode = #tpu.pipeline_mode<synchronous>, transform_indices = @transform_1, window_bounds = array<i64: 32, 2>}, {pipeline_mode = #tpu.pipeline_mode<synchronous>, transform_indices = @transform_2, window_bounds = array<i64: 1, 2>}, {pipeline_mode = #tpu.pipeline_mode<synchronous>, transform_indices = @transform_3, window_bounds = array<i64: 2, 32>}, {pipeline_mode = #tpu.pipeline_mode<synchronous>, transform_indices = @transform_4, window_bounds = array<i64: 1, 32>}, {pipeline_mode = #tpu.pipeline_mode<synchronous>, transform_indices = @transform_5, window_bounds = array<i64: 32, 1>}, {transform_indices = @transform_6, window_bounds = array<i64: 1>}, {transform_indices = @transform_7, window_bounds = array<i64: 1, 32, 256>}]} {
    %c0 = arith.constant 0 : index
    %c0_0 = arith.constant 0 : index
    %c0_1 = arith.constant 0 : index
    %0 = vector.load %arg1[%c0, %c0_0, %c0_1] : memref<1x32x256xf32, #tpu.memory_space<vmem>>, vector<1x32x256xf32>
    %cst = arith.constant dense<0.000000e+00> : vector<1x32xf32>
    %1 = vector.multi_reduction <add>, %0, %cst [2] : vector<1x32x256xf32> to vector<1x32xf32>
    %cst_2 = arith.constant 3.906250e-03 : f32
    %2 = vector.broadcast %cst_2 : f32 to vector<1x32xf32>
    %3 = arith.mulf %1, %2 : vector<1x32xf32>
    %c0_3 = arith.constant 0 : index
    %c0_4 = arith.constant 0 : index
    %4 = vector.load %arg2[%c0_3, %c0_4] : memref<32x2xf32, #tpu.memory_space<vmem>>, vector<32x2xf32>
    %cst_5 = arith.constant dense<0.000000e+00> : vector<1x2xf32>
    %5 = tpu.matmul %3, %4, %cst_5 {dimension_numbers = #tpu.dot_dimension_numbers<[1], [0], [0], [1], [0, 0, 1, 1], [], []>} : vector<1x32xf32>, vector<32x2xf32>, vector<1x2xf32> -> vector<1x2xf32>
    %c0_6 = arith.constant 0 : index
    %c0_7 = arith.constant 0 : index
    %6 = vector.load %arg3[%c0_6, %c0_7] : memref<1x2xf32, #tpu.memory_space<vmem>>, vector<1x2xf32>
    %7 = arith.addf %5, %6 : vector<1x2xf32>
    %cst_8 = arith.constant 0.000000e+00 : f32
    %8 = vector.broadcast %cst_8 : f32 to vector<1x2xf32>
    %9 = arith.maximumf %7, %8 : vector<1x2xf32>
    %c0_9 = arith.constant 0 : index
    %c0_10 = arith.constant 0 : index
    %10 = vector.load %arg4[%c0_9, %c0_10] : memref<2x32xf32, #tpu.memory_space<vmem>>, vector<2x32xf32>
    %cst_11 = arith.constant dense<0.000000e+00> : vector<1x32xf32>
    %11 = tpu.matmul %9, %10, %cst_11 {dimension_numbers = #tpu.dot_dimension_numbers<[1], [0], [0], [1], [0, 0, 1, 1], [], []>} : vector<1x2xf32>, vector<2x32xf32>, vector<1x32xf32> -> vector<1x32xf32>
    %c0_12 = arith.constant 0 : index
    %c0_13 = arith.constant 0 : index
    %12 = vector.load %arg5[%c0_12, %c0_13] : memref<1x32xf32, #tpu.memory_space<vmem>>, vector<1x32xf32>
    %13 = arith.addf %11, %12 : vector<1x32xf32>
    %14 = arith.negf %13 : vector<1x32xf32>
    %15 = math.exp %14 : vector<1x32xf32>
    %cst_14 = arith.constant 1.000000e+00 : f32
    %16 = vector.broadcast %cst_14 : f32 to vector<1x32xf32>
    %17 = arith.addf %16, %15 : vector<1x32xf32>
    %18 = arith.divf %16, %17 : vector<1x32xf32>
    %c0_15 = arith.constant 0 : index
    %c0_16 = arith.constant 0 : index
    %19 = vector.load %arg6[%c0_15, %c0_16] : memref<32x1xf32, #tpu.memory_space<vmem>>, vector<32x1xf32>
    %20 = vector.shape_cast %19 : vector<32x1xf32> to vector<1x32x1xf32>
    %21 = vector.broadcast %20 : vector<1x32x1xf32> to vector<1x32x256xf32>
    %22 = arith.mulf %0, %21 : vector<1x32x256xf32>
    %cst_17 = arith.constant dense<0.000000e+00> : vector<1x256xf32>
    %23 = vector.multi_reduction <add>, %22, %cst_17 [1] : vector<1x32x256xf32> to vector<1x256xf32>
    %24 = vector.shape_cast %23 : vector<1x256xf32> to vector<1x1x256xf32>
    %c0_18 = arith.constant 0 : index
    %25 = memref.load %arg7[%c0_18] : memref<1xf32, #tpu.memory_space<smem>>
    %26 = vector.broadcast %25 : f32 to vector<1x1x256xf32>
    %27 = arith.addf %24, %26 : vector<1x1x256xf32>
    %28 = arith.negf %27 : vector<1x1x256xf32>
    %29 = math.exp %28 : vector<1x1x256xf32>
    %cst_19 = arith.constant 1.000000e+00 : f32
    %30 = vector.broadcast %cst_19 : f32 to vector<1x1x256xf32>
    %31 = arith.addf %30, %29 : vector<1x1x256xf32>
    %32 = arith.divf %30, %31 : vector<1x1x256xf32>
    %33 = vector.shape_cast %18 : vector<1x32xf32> to vector<1x32x1xf32>
    %34 = vector.broadcast %33 : vector<1x32x1xf32> to vector<1x32x256xf32>
    %35 = vector.broadcast %32 : vector<1x1x256xf32> to vector<1x32x256xf32>
    %36 = arith.addf %34, %35 : vector<1x32x256xf32>
    %37 = arith.mulf %0, %36 : vector<1x32x256xf32>
    %c0_20 = arith.constant 0 : index
    %c0_21 = arith.constant 0 : index
    %c0_22 = arith.constant 0 : index
    %38 = vector.load %arg8[%c0_20, %c0_21, %c0_22] : memref<1x32x256xf32, #tpu.memory_space<vmem>>, vector<1x32x256xf32>
    tpu.vector_store %arg8[%c0_20, %c0_21, %c0_22], %37 {strides = array<i32>} : memref<1x32x256xf32, #tpu.memory_space<vmem>>, vector<1x32x256xf32>,
    return
  }
  func.func @transform_0(%arg0: i32) -> (i32, i32, i32) {
    %c0_i32 = arith.constant 0 : i32
    %c0_i32_0 = arith.constant 0 : i32
    %c0_i32_1 = arith.constant 0 : i32
    return %arg0, %c0_i32, %c0_i32_0 : i32, i32, i32
  }
  func.func @transform_1(%arg0: i32) -> (i32, i32) {
    %c0_i32 = arith.constant 0 : i32
    %c0_i32_0 = arith.constant 0 : i32
    %c0_i32_1 = arith.constant 0 : i32
    return %c0_i32, %c0_i32_0 : i32, i32
  }
  func.func @transform_2(%arg0: i32) -> (i32, i32) {
    %c0_i32 = arith.constant 0 : i32
    %c0_i32_0 = arith.constant 0 : i32
    %c0_i32_1 = arith.constant 0 : i32
    return %c0_i32, %c0_i32_0 : i32, i32
  }
  func.func @transform_3(%arg0: i32) -> (i32, i32) {
    %c0_i32 = arith.constant 0 : i32
    %c0_i32_0 = arith.constant 0 : i32
    %c0_i32_1 = arith.constant 0 : i32
    return %c0_i32, %c0_i32_0 : i32, i32
  }
  func.func @transform_4(%arg0: i32) -> (i32, i32) {
    %c0_i32 = arith.constant 0 : i32
    %c0_i32_0 = arith.constant 0 : i32
    %c0_i32_1 = arith.constant 0 : i32
    return %c0_i32, %c0_i32_0 : i32, i32
  }
  func.func @transform_5(%arg0: i32) -> (i32, i32) {
    %c0_i32 = arith.constant 0 : i32
    %c0_i32_0 = arith.constant 0 : i32
    %c0_i32_1 = arith.constant 0 : i32
    return %c0_i32, %c0_i32_0 : i32, i32
  }
  func.func @transform_6(%arg0: i32) -> i32 {
    %c0_i32 = arith.constant 0 : i32
    %c0_i32_0 = arith.constant 0 : i32
    return %c0_i32 : i32
  }
  func.func @transform_7(%arg0: i32) -> (i32, i32, i32) {
    %c0_i32 = arith.constant 0 : i32
    %c0_i32_0 = arith.constant 0 : i32
    %c0_i32_1 = arith.constant 0 : i32
    return %arg0, %c0_i32, %c0_i32_0 : i32, i32, i32
  }
}

</mosaic_0001>

<bundles_post_ra>
// kernel: tpu_custom_call.1
= control target key start
LH: loop header
LB: loop body
LE: loop exit
PB: predicated region body
PF: predicated region fallthrough
CT: control target
= control target key end

     0   :  { %s1203_s0 = inlined_call_operand.hbm [shape: f32[2,32,256], index: 0, kind: input, shape index: {}]   ;;  %s1204_s1 = inlined_call_operand.vmem [shape: f32[32,2], index: 1, kind: input, shape index: {}]   ;;  %s1205_s2 = inlined_call_operand.vmem [shape: f32[1,2], index: 2, kind: input, shape index: {}]   ;;  %s1206_s3 = inlined_call_operand.vmem [shape: f32[2,32], index: 3, kind: input, shape index: {}]   ;;  %s1207_s4 = inlined_call_operand.vmem [shape: f32[1,32], index: 4, kind: input, shape index: {}]   ;;  %s1208_s5 = inlined_call_operand.vmem [shape: f32[32,1], index: 5, kind: input, shape index: {}]   ;;  %s1209_s6 = inlined_call_operand.<no memory space> [shape: f32[1], index: 6, kind: input, shape index: {}]   ;;  %s1210_s7 = inlined_call_operand.hbm [shape: f32[2,32,256], index: 7, kind: output, shape index: {}]  }
   0x1   :  { %12 = sst [smem:[#allocation2]] %s1209_s6 }
   0x2   :  { %13 = vsyncpa [#allocation4], 0 }
   0x3   :  { %15 = vsyncpa [#allocation4 + $0x1], 0 }
   0x4   :  { %16 = vsyncpa [#allocation5], 0 }
   0x5   :  { %18 = vsyncpa [#allocation5 + $0x1], 0  ;;  %s972_s26 = smov 0   ;;  %s974_s27 = smov 0  }
   0x6   :  { %s976_s28 = smov 0   ;;  %s978_s29 = smov 0  }
   0x7 LB: > { %s993_s6 = sadd.s32 4294967295, %s918_s29   ;;  %s714_s30 = sadd.s32 4294967294, %s918_s29   ;;  %s918_s29 = sphi %s978_s29, %s1225_s29   ;;  %s914_s28 = sphi %s976_s28, %s1224_s28   ;;  %s910_s27 = sphi %s974_s27, %s1223_s27   ;;  %s906_s26 = sphi %s972_s26, %s1222_s26  }
   0x8   : > { %s997_s8 = sadd.s32 1, %s918_s29   ;;  %s31_s9 = sadd.s32 1, %s914_s28 }
   0x9   : > { %s28_s10 = ssub.s32 %s918_s29, %s997_s8  ;;  %p38_p0 = scmp.ne.s32.totalorder %s914_s28, %s910_s27 }
   0xa   : > { %p29_p1 = scmp.eq.s32.totalorder %s28_s10, 0  ;;  %p39_p2 = scmp.eq.s32.totalorder %s918_s29, 0 }
   0xb   : > { %p44_p3 = scmp.ne.s32.totalorder %s910_s27, %s906_s26  ;;  %p45_p4 = scmp.eq.s32.totalorder %s993_s6, 0 }
   0xc   : > { %s1009_s11 = scalar_select %p29_p1, %s914_s28, %s31_s9  }
   0xd   : > { %p1011_p5 = por %p39_p2, %p38_p0  ;;  %p1015_p6 = por %p45_p4, %p44_p3 }
   0xe   : > { %p194_p7 = scmp.eq.s32.totalorder %s993_s6, 1  ;;  %p200_p8 = scmp.eq.s32.totalorder %s714_s30, 1 }
   0xf   : > { %s1214_s13 = scalar_select %p1015_p6, 1, 0 }
  0x10   : > { %p771_p10 = scmp.lt.s32.totalorder %s918_s29, 2  ;;  %p1022_p11 = por %p194_p7, %p38_p0 }
  0x11   : > { %p1026_p12 = por %p200_p8, %p44_p3  ;;  %s238_s16 = sand.u32 1, %s914_s28  }
  0x12   : > { %s1215_s14 = scalar_select %p1022_p11, 1, 0 }
  0x13   : > { %s1216_s15 = scalar_select %p1026_p12, 1, 0 }
  0x14   : > { %s734_s17 = sshll.u32 %s918_s29, 10  ;;  %s717_s18 = sshll.u32 %s238_s16, 6 }
  0x15   : > { %s1035_s21 = scalar_lea.hbm %s1203_s0, %s734_s17  ;;  %s242_s22 = scalar_lea.vmem [#allocation3], %s717_s18 }
  0x16   : > { %s249_s23 = sshll.u32 %s242_s22, 4  ;;  %p1039_p13 = pnand %p771_p10, %p1011_p5  ;;  %s1043_s23 = int_to_ptr.vmem [resolvable:$true] %s249_s23 }
  0x17   : > { %s1045_s25 = scalar_lea.sflag [#allocation4], %s238_s16  ;;  %s826_s30 = scalar_lea.hbm %s1035_s21, 1024 }
  0x18   : > { %p827_p0 = scmp.ne.s32.totalorder %s1035_s21, %s826_s30  ;;  %p828_p1 = pneg %p1039_p13 }
  0x19   : > { %s831_s17 = scalar_lea.hbm %s1203_s0, 2048  ;;  %p832_p4 = scmp.lt.s32.totalorder %s1035_s21, %s1203_s0 }
  0x1a   : > { %p829_p2 = pnand %p828_p1, %p827_p0  ;;  %p833_p5 = scmp.lt.s32.totalorder %s831_s17, %s826_s30 }
  0x1c   : > { %p830_p3 = pneg %p829_p2  ;;  %p834_p7 = por %p833_p5, %p832_p4 }
  0x1e   : > { %p835_p8 = pnand %p834_p7, %p830_p3 }
  0x20   : > { %838 = shalt.err (!%p835_p8)
}
  0x21   : > { %s839_s16 = scalar_lea.vmem %s1043_s23, 1024  ;;  %s920_s19 = smov [#allocation3]  }
  0x22   : > { %p840_p10 = scmp.ne.s32.totalorder %s1043_s23, %s839_s16  ;;  %s844_s20 = sshll.u32 %s920_s19, 4  ;;  %s845_s20 = int_to_ptr.vmem [resolvable:$false] %s844_s20 }
  0x23   : > { %s846_s22 = scalar_lea.vmem %s845_s20, 2048  ;;  %p847_p2 = scmp.lt.s32.totalorder %s1043_s23, %s845_s20 }
  0x24   : > { %p842_p9 = pnand %p840_p10, %p828_p1  ;;  %p848_p12 = scmp.lt.s32.totalorder %s846_s22, %s839_s16 }
  0x26   : > { %p843_p0 = pneg %p842_p9  ;;  %p849_p11 = por %p848_p12, %p847_p2 }
  0x28   : > { %p850_p6 = pnand %p849_p11, %p843_p0 }
  0x2a   : > { %853 = shalt.err (!%p850_p6)
}
  0x2b   : > { %s921_s30 = smov 256   ;;  %s922_s9 = smov 16  }
  0x2c   : > { %766 = dma.hbm_to_vmem [thread:$0]  (!%p1039_p13), %s1035_s21, 1024, %s1043_s23, %s1045_s25, %s921_s30, %s921_s30, %s922_s9  }
  0x2d   : > { %p720_p9 = scmp.ge.s32.totalorder %s918_s29, 1  ;;  %p257_p1 = scmp.lt.s32.totalorder %s918_s29, 3 }
  0x2f   : > { %p258_p3 = pnand %p720_p9, %p257_p1 }
  0x30   : > { %s1069_s10 = sand.u32 (!%p258_p3), 1, %s910_s27   ;;  %p1218_p6 = scmp.ne.s32.totalorder (!%p258_p3), %s1214_s13, 0 }
  0x31   : > { %261 = sbr.rel (%p258_p3) target bundleno = 778 (0x30a), region = 48  ;;  %s721_s17 = sshll.u32 (!%p258_p3), %s1069_s10, 6 }
  0x32   : > { %s264_s12 = scalar_lea.sflag (!%p258_p3), [#allocation4], %s1069_s10  ;;  %s267_s18 = scalar_lea.vmem (!%p258_p3), [#allocation3], %s721_s17 }
  0x36   : > { %897 = dma.done.wait (%p1218_p6), %s264_s12, 1024  }
  0x37   : > { %899 = vsyncadd (%p1218_p6), %s264_s12, 4294966272  ;;  %v1079_v0 = vld [vmem:[%s267_s18] sm:$0xff]  ;;  %v1081_v1 = vld [vmem:[%s267_s18 + $0x8] sm:$0xff]  ;;  %v923_v12 = vmov 0.0   ;;  %vm924_vm0 = vmmov 0   ;;  %v331_v17 = vlaneseq  ;;  %vm342_vm1 = vcmask 130112  }
  0x38   : > { %v1083_v2 = vld [vmem:[%s267_s18 + $0x20] sm:$0xff]  ;;  %v306_v3 = vadd.f32 %v1081_v1, %v1079_v0  ;;  %v1087_v4 = vld [vmem:[%s267_s18 + $0x28] sm:$0xff]  ;;  %v1089_v5 = vld [vmem:[%s267_s18 + $0x10] sm:$0xff]  ;;  %743 = vmatprep.subr.mxu0 %v923_v12  ;;  %754 = vmatprep.subr.mxu1 %v923_v12  ;;  %vm349_vm2 = vcmask 195712   ;;  %vm356_vm3 = vcmask 261312   ;;  %vm358_vm4 = vcmask 261120  }
  0x39   : > { %v1091_v6 = vld [vmem:[%s267_s18 + $0x18] sm:$0xff]  ;;  %v312_v7 = vadd.f32 %v1087_v4, %v1083_v2  ;;  %v1095_v8 = vld [vmem:[%s267_s18 + $0x30] sm:$0xff]  ;;  %v323_v15 = vld [vmem:[%s1204_s1 + $0x8] sm:$0xff]  ;;  %751 = vmatprep.mubr.msk.f32.mxu0 %vm924_vm0, %v923_v12  ;;  %756 = vmatprep.mubr.msk.f32.mxu1 %vm924_vm0, %v923_v12  ;;  %v332_v18 = vand.u32 127, %v331_v17  ;;  %v334_v19 = vshrl.u32 %v331_v17, 7  ;;  %vm438_vm5 = vcmask 1041408  }
  0x3a   : > { %v1097_v9 = vld [vmem:[%s267_s18 + $0x38] sm:$0xff]  ;;  %307 = vadd.xlane.f32.xlu0 %v306_v3  ;;  %v309_v10 = vadd.f32 %v1091_v6, %v1089_v5  ;;  %v324_v14 = vld [vmem:[%s1204_s1 + $0x10] sm:$0xff]  ;;  %v322_v16 = vld [vmem:[%s1204_s1] sm:$0xff]  ;;  %v925_v45 = vmov 0   ;;  %vm434_vm6 = vcmask 15360   ;;  %s568_s30 = sld [smem:[#allocation2]] }
  0x3b   : > { %313 = vadd.xlane.f32.xlu1 %v312_v7  ;;  %v315_v11 = vadd.f32 %v1097_v9, %v1095_v8  ;;  %v325_v13 = vld [vmem:[%s1204_s1 + $0x18] sm:$0xff]  ;;  %v337_v20 = vadd.s32 4294967288, %v332_v18  ;;  %v344_v22 = vadd.s32 4294967280, %v332_v18  ;;  %v351_v23 = vadd.s32 4294967272, %v332_v18  ;;  %v432_v42 = vld [vmem:[%s1206_s3] sm:$0x3]  ;;  %812 = vset.pattern.permute.xlu0 %v925_v45 }
  0x3c   : > { %744 = vmatpush3.msra.mxu0 %v325_v13  ;;  %v335_v25 = vsub.s32 %v332_v18, %v334_v19  ;;  %755 = vmatpush3.msk.msra.mxu1 %vm438_vm5, %v432_v42  ;;  %v519_v43 = vld [vmem:[%s1208_s5 + $0x8] sm:$0xff]  ;;  %v518_v44 = vld [vmem:[%s1208_s5] sm:$0xff]  ;;  %v520_v46 = vld [vmem:[%s1208_s5 + $0x10] sm:$0xff]  ;;  %v586_v60 = vsub.s32 0, %v334_v19  ;;  %s297_s9 = scalar_lea.vmem [#allocation6], %s721_s17  ;;  %s735_s12 = sshll.u32 %s993_s6, 10 }
  0x3d   : > { %745 = vmatprep.subr.mxu0 %v923_v12  ;;  %v340_v27 = vsub.s32 %v337_v20, %v334_v19  ;;  %v347_v28 = vsub.s32 %v344_v22, %v334_v19  ;;  %v354_v31 = vsub.s32 %v351_v23, %v334_v19  ;;  %813 = vset.pattern.permute.xlu1 %v925_v45  ;;  %v521_v47 = vld [vmem:[%s1208_s5 + $0x18] sm:$0xff]  ;;  %v326_v48 = vld [vmem:[%s1205_s2] sm:$0x1]  ;;  %s641_s17 = sshll.u32 %s297_s9, 4  ;;  %s1156_s21 = scalar_lea.hbm %s1210_s7, %s735_s12  ;;  %s1158_s17 = int_to_ptr.vmem [resolvable:$true] %s641_s17 }
  0x3e   : > { %310 = vadd.xlane.f32.xlu0 %v309_v10  ;;  %746 = vmatpush3.msra.mxu0 %v324_v14  ;;  %v433_v53 = vld [vmem:[%s1207_s4] sm:$0x1]  ;;  %s628_s6 = scalar_lea.sflag [#allocation5], %s1069_s10  ;;  %s854_s23 = scalar_lea.vmem %s1158_s17, 1024 }
  0x3f   : > { %316 = vadd.xlane.f32.xlu1 %v315_v11  ;;  %747 = vmatprep.subr.mxu0 %v923_v12  ;;  %p855_p11 = scmp.ne.s32.totalorder %s1158_s17, %s854_s23  ;;  %p1219_p12 = scmp.ne.s32.totalorder %s1215_s14, 0 }
  0x40   : > { %748 = vmatpush3.msra.mxu0 %v323_v15  ;;  %s926_s24 = smov [#allocation6]  }
  0x41   : > { %749 = vmatprep.subr.mxu0 %v923_v12  ;;  %p856_p13 = pnand %p855_p11, %p1219_p12  ;;  %s858_s25 = sshll.u32 %s926_s24, 4  ;;  %s859_s25 = int_to_ptr.vmem [resolvable:$false] %s858_s25 }
  0x42   : > { %750 = vmatpush3.msra.mxu0 %v322_v16  ;;  %s860_s16 = scalar_lea.vmem %s859_s25, 2048  ;;  %p861_p5 = scmp.lt.s32.totalorder %s1158_s17, %s859_s25 }
  0x43   : > { %p857_p4 = pneg %p856_p13  ;;  %p862_p7 = scmp.lt.s32.totalorder %s860_s16, %s854_s23 }
  0x45   : > { %p863_p8 = por %p862_p7, %p861_p5 }
  0x47   : > { %p864_p10 = pnand %p863_p8, %p857_p4 }
  0x50   : > { %529 = vperm.xlu1 %813, %v519_v43  }
  0x54   : > { %524 = vperm.xlu0 %812, %v518_v44   ;;  %534 = vperm.xlu1 %813, %v520_v46  }
  0x58   : > { %539 = vperm.xlu1 %813, %v521_v47  }
  0xc3   : > { %v308_v21 = vpop.xlane.xlu0 %307 }
  0xc4   : > { %v314_v24 = vpop.xlane.xlu1 %313  ;;  %v318_v26 = vmul.f32 0.00390625, %v308_v21 }
  0xc5   : > { %v320_v29 = vmul.f32 0.00390625, %v314_v24 }
  0xc6   : > { %v336_v35 = vrot.slane %v318_v26, %v335_v25 }
  0xc7   : > { %v311_v30 = vpop.xlane.xlu0 %310  ;;  %v348_v37 = vrot.slane %v320_v29, %v347_v28 }
  0xc8   : > { %v319_v32 = vmul.f32 0.00390625, %v311_v30  ;;  %v317_v33 = vpop.xlane.xlu1 %316 }
  0xc9   : > { %v321_v34 = vmul.f32 0.00390625, %v317_v33 }
  0xca   : > { %v341_v36 = vrot.slane %v319_v32, %v340_v27 }
  0xcb   : > { %v355_v38 = vrot.slane %v321_v34, %v354_v31 }
  0xcc   : > { %v343_v39 = vsel %vm342_vm1, %v341_v36, %v336_v35  ;;  %v530_v63 = vpop.permute.xlu1 %529  ;;  %v569_v36 = vstv %s568_s30 }
  0xcd   : > { %v350_v40 = vsel %vm349_vm2, %v348_v37, %v343_v39  ;;  %v544_v10 = vmul.f32 %v530_v63, %v1089_v5  ;;  %v545_v12 = vmul.f32 %v530_v63, %v1091_v6 }
  0xce   : > { %v357_v41 = vsel %vm356_vm3, %v355_v38, %v350_v40 }
  0xcf   : > { %752 = vmatmul.mubr.msk.f32.vlgmr.msra.gmra.mxu0 %vm358_vm4, %v357_v41  ;;  %v525_v3 = vpop.permute.xlu0 %524 }
  0xd0   : > { %v535_v7 = vpop.permute.xlu1 %534  ;;  %v542_v11 = vmul.f32 %v525_v3, %v1079_v0  ;;  %v543_v13 = vmul.f32 %v525_v3, %v1081_v1 }
  0xd1   : > { %v546_v14 = vmul.f32 %v535_v7, %v1083_v2  ;;  %v547_v16 = vmul.f32 %v535_v7, %v1087_v4 }
  0xd2   : > { %v550_v15 = vadd.f32 %v544_v10, %v542_v11  ;;  %v559_v17 = vadd.f32 %v545_v12, %v543_v13 }
  0xd4   : > { %v540_v18 = vpop.permute.xlu1 %539  ;;  %v551_v19 = vadd.f32 %v550_v15, %v546_v14  ;;  %v560_v21 = vadd.f32 %v559_v17, %v547_v16 }
  0xd5   : > { %v548_v20 = vmul.f32 %v540_v18, %v1095_v8  ;;  %v549_v22 = vmul.f32 %v540_v18, %v1097_v9 }
  0xd7   : > { %v552_v23 = vadd.f32 %v551_v19, %v548_v20  ;;  %v561_v24 = vadd.f32 %v560_v21, %v549_v22 }
  0xd9   : > { %v553_v25 = vrot.slane %v552_v23, 4  ;;  %v562_v26 = vrot.slane %v561_v24, 4 }
  0xdb   : > { %v554_v27 = vadd.f32 %v553_v25, %v552_v23  ;;  %v563_v28 = vadd.f32 %v562_v26, %v561_v24 }
  0xdd   : > { %v555_v29 = vrot.slane %v554_v27, 2  ;;  %v564_v30 = vrot.slane %v563_v28, 2 }
  0xdf   : > { %v556_v31 = vadd.f32 %v555_v29, %v554_v27  ;;  %v565_v32 = vadd.f32 %v564_v30, %v563_v28 }
  0xe1   : > { %v557_v33 = vrot.slane %v556_v31, 1  ;;  %v566_v34 = vrot.slane %v565_v32, 1 }
  0xe3   : > { %v558_v35 = vadd.f32 %v557_v33, %v556_v31  ;;  %v567_v37 = vadd.f32 %v566_v34, %v565_v32 }
  0xe5   : > { %v570_v38 = vadd.f32 %v569_v36, %v558_v35  ;;  %v571_v39 = vadd.f32 %v569_v36, %v567_v37 }
  0xe7   : > { %v727_v40 = vmul.f32 -1.442695, %v570_v38  ;;  %v728_v41 = vmul.f32 -1.442695, %v571_v39 }
 0x18f   : > { %v427_v49 = vpop.f32.mrf.mxu0 }
 0x190   : > { %v428_v50 = vadd.f32 %v427_v49, %v326_v48 }
 0x191   : > { %v753_v51 = vpop.f32.mrf.mxu0 }
 0x192   : > { %v431_v52 = vmax.f32 %v428_v50, 0.0 }
 0x194   : > { %757 = vmatmul.mubr.msk.f32.vlgmr.msra.gmra.mxu1 %vm434_vm6, %v431_v52 }
 0x254   : > { %v508_v54 = vpop.f32.mrf.mxu1 }
 0x255   : > { %v509_v55 = vadd.f32 %v508_v54, %v433_v53 }
 0x256   : > { %v758_v56 = vpop.f32.mrf.mxu1 }
 0x257   : > { %v726_v57 = vmul.f32 -1.442695, %v509_v55 }
 0x259   : > { %814 = vpow2.f32 %v726_v57 }
 0x266   : > { %v815_v58 = vpop.eup %814 }
 0x267   : > { %v515_v59 = vadd.f32 1.0, %v815_v58 }
 0x269   : > { %816 = vrcp.f32 %v515_v59 }
 0x26a   : > { %818 = vpow2.f32 %v727_v40 }
 0x26b   : > { %820 = vpow2.f32 %v728_v41 }
 0x276   : > { %v817_v61 = vpop.eup %816 }
 0x277   : > { %v587_v62 = vrot.slane %v817_v61, %v586_v60  ;;  %v819_v42 = vpop.eup %818 }
 0x278   : > { %v821_v43 = vpop.eup %820  ;;  %v578_v44 = vadd.f32 1.0, %v819_v42 }
 0x279   : > { %589 = vbcast.lane.b32.xlu1 %v587_v62, 256  ;;  %v579_v45 = vadd.f32 1.0, %v821_v43 }
 0x27a   : > { %822 = vrcp.f32 %v578_v44 }
 0x27b   : > { %824 = vrcp.f32 %v579_v45 }
 0x27d   : > { %593 = vbcast.lane.b32.xlu1 %v587_v62, 264 }
 0x281   : > { %597 = vbcast.lane.b32.xlu1 %v587_v62, 272 }
 0x285   : > { %601 = vbcast.lane.b32.xlu1 %v587_v62, 280 }
 0x287   : > { %v823_v46 = vpop.eup %822 }
 0x288   : > { %v825_v47 = vpop.eup %824 }
 0x2eb   : > { %v590_v48 = vpop.permute.xlu1 %589 }
 0x2ec   : > { %v603_v49 = vadd.f32 %v823_v46, %v590_v48  ;;  %v604_v50 = vadd.f32 %v825_v47, %v590_v48 }
 0x2ee   : > { %v611_v51 = vmul.f32 %v603_v49, %v1079_v0  ;;  %v612_v52 = vmul.f32 %v604_v50, %v1081_v1 }
 0x2ef   : > { %v594_v53 = vpop.permute.xlu1 %593 }
 0x2f0   : > { %619 = vst [vmem:[%s297_s9] sm:$0xff] %v611_v51  ;;  %620 = vst [vmem:[%s297_s9 + $0x8] sm:$0xff] %v612_v52  ;;  %v605_v54 = vadd.f32 %v823_v46, %v594_v53  ;;  %v606_v55 = vadd.f32 %v825_v47, %v594_v53 }
 0x2f2   : > { %v613_v56 = vmul.f32 %v605_v54, %v1089_v5  ;;  %v614_v57 = vmul.f32 %v606_v55, %v1091_v6 }
 0x2f3   : > { %v598_v58 = vpop.permute.xlu1 %597 }
 0x2f4   : > { %621 = vst [vmem:[%s297_s9 + $0x10] sm:$0xff] %v613_v56  ;;  %622 = vst [vmem:[%s297_s9 + $0x18] sm:$0xff] %v614_v57  ;;  %v607_v59 = vadd.f32 %v823_v46, %v598_v58  ;;  %v608_v60 = vadd.f32 %v825_v47, %v598_v58 }
 0x2f6   : > { %v615_v0 = vmul.f32 %v607_v59, %v1083_v2  ;;  %v616_v1 = vmul.f32 %v608_v60, %v1087_v4 }
 0x2f7   : > { %v602_v61 = vpop.permute.xlu1 %601 }
 0x2f8   : > { %623 = vst [vmem:[%s297_s9 + $0x20] sm:$0xff] %v615_v0  ;;  %624 = vst [vmem:[%s297_s9 + $0x28] sm:$0xff] %v616_v1  ;;  %v609_v62 = vadd.f32 %v823_v46, %v602_v61  ;;  %v610_v5 = vadd.f32 %v825_v47, %v602_v61 }
 0x2fa   : > { %v617_v2 = vmul.f32 %v609_v62, %v1095_v8  ;;  %v618_v4 = vmul.f32 %v610_v5, %v1097_v9 }
 0x2fc   : > { %625 = vst [vmem:[%s297_s9 + $0x30] sm:$0xff] %v617_v2  ;;  %626 = vst [vmem:[%s297_s9 + $0x38] sm:$0xff] %v618_v4 }
 0x2fd   : > { %867 = shalt.err (!%p864_p10)
}
 0x2fe   : > { %s868_s19 = scalar_lea.hbm %s1156_s21, 1024  ;;  %s872_s30 = scalar_lea.hbm %s1210_s7, 2048 }
 0x2ff   : > { %p869_p0 = scmp.ne.s32.totalorder %s1156_s21, %s868_s19  ;;  %p873_p1 = scmp.lt.s32.totalorder %s1156_s21, %s1210_s7 }
 0x300   : > { %p874_p3 = scmp.lt.s32.totalorder %s872_s30, %s868_s19 }
 0x301   : > { %p870_p2 = pnand %p869_p0, %p1219_p12 }
 0x302   : > { %p875_p6 = por %p874_p3, %p873_p1 }
 0x303   : > { %p871_p9 = pneg %p870_p2 }
 0x305   : > { %p876_p11 = pnand %p875_p6, %p871_p9 }
 0x307   : > { %879 = shalt.err (!%p876_p11)
}
 0x308   : > { %s927_s18 = smov 256   ;;  %s928_s13 = smov 16  }
 0x309   : > { %761 = dma.vmem_to_hbm [thread:$0]  (%p1219_p12), %s1158_s17, 1024, %s1156_s21, %s628_s6, %s927_s18, %s927_s18, %s928_s13  }
 0x30a PF: > { %s656_s23 = sand.u32 1, %s906_s26   ;;  %p1220_p13 = scmp.ne.s32.totalorder %s1216_s15, 0 }
 0x30b   : > { %p1221_p4 = scmp.ge.s32.totalorder %s918_s29, 2  ;;  %s657_s24 = scalar_lea.sflag [#allocation5], %s656_s23 }
 0x30d   : > { %p768_p5 = pnand %p1221_p4, %p1220_p13 }
 0x30f   : > { %p769_p7 = pneg %p768_p5 }
 0x311   : > { %901 = dma.done.wait (%p769_p7), %s657_s24, 1024  }
 0x312   : > { %903 = vsyncadd (%p769_p7), %s657_s24, 4294966272  ;;  %p21_p8 = scmp.ge.s32.totalorder %s997_s8, 4   ;;  %s1222_s26 = smov %s910_s27 }
 0x313   : > { %s1223_s27 = smov %s914_s28  ;;  %s1224_s28 = smov %s1009_s11 }
 0x314   : > { %s1225_s29 = smov %s997_s8  ;;  %23 = sbr.rel (!%p21_p8) target bundleno = 7 (0x7), region = 93 }
 0x319   :  { %662 = vsyncpa [#allocation4], 1 }
 0x31a   :  { %664 = vsyncpa [#allocation4 + $0x1], 1 }
 0x31b   :  { %665 = vsyncpa [#allocation5], 1 }
 0x31c   :  { %667 = vsyncpa [#allocation5 + $0x1], 1 }

</bundles_post_ra>
